<compile_context>
chip_gen: v5e
topology: v5e:2x2
jax: 0.10.0
libtpu: 0.0.40
codegen_flags: <defaults>
</compile_context>

<pallas_src>
import functools
import math

import jax
import jax.numpy as jnp
from jax.experimental import pallas as pl
from jax.experimental.pallas import tpu as pltpu


def _round_up(n, m):
    return ((n + m - 1) // m) * m


def _jacobi_thetas(i, a, b):
    theta_k = (2 * i + a + b) * (2 * i + a + b - 1) / (2 * i * (i + a + b))
    theta_k1 = (2 * i + a + b - 1) * (a * a - b * b) / (
        2 * i * (i + a + b) * (2 * i + a + b - 2)
    )
    theta_k2 = (i + a - 1) * (i + b - 1) * (2 * i + a + b) / (
        i * (i + a + b) * (2 * i + a + b - 2)
    )
    return theta_k, theta_k1, theta_k2


def _make_jacobi_kernel(degree: int, a: float, b: float):
    assert degree >= 1

    def kernel(x_ref, w_ref, bias_ref, o_ref):
        # x_ref   : (tbr, g*I)          g batch rows packed per kernel row
        # w_ref   : (degree, g*I, g*O)  block-diagonal fused coeffs (resident)
        # bias_ref: (1, g*O)            degree-0 contribution, replicated g times
        # o_ref   : (tbr, g*O)          lane-dense output slab
        x = x_ref[...].astype(jnp.float32)
        mm = w_ref.dtype

        # P_1 (P_0 == 1 is folded into the precomputed bias).
        p_curr = (a - b + (a + b + 2.0) * x) * 0.5
        p_prev = None

        # Per-degree MXU accumulation (no concatenate; only two polys live).
        acc = jnp.dot(p_curr.astype(mm), w_ref[0],
                      preferred_element_type=jnp.float32)
        for i in range(2, degree + 1):
            t_k, t_k1, t_k2 = _jacobi_thetas(i, a, b)
            lower = t_k2 if p_prev is None else t_k2 * p_prev
            p_next = (t_k * x + t_k1) * p_curr - lower
            acc = acc + jnp.dot(p_next.astype(mm), w_ref[i - 1],
                                preferred_element_type=jnp.float32)
            p_prev, p_curr = p_curr, p_next

        o_ref[...] = (acc + bias_ref[...]).astype(o_ref.dtype)

    return kernel


@functools.partial(
    jax.jit,
    static_argnames=("input_dim", "output_dim", "degree", "a", "b", "tb",
                     "x_dtype", "out_dtype", "matmul_dtype"),
)
def jacobi_layer(x, jacobi_coeffs, *, input_dim, output_dim, degree,
                 a=1.0, b=1.0, tb=16384,
                 x_dtype=jnp.float32, out_dtype=jnp.float32,
                 matmul_dtype=jnp.float32):
    """Pallas implementation of JacobiLayer.forward.

    x             : any shape whose flatten gives (-1, input_dim)
    jacobi_coeffs : (input_dim, output_dim, degree + 1)   (PyTorch param layout)
    returns       : (B, output_dim) out_dtype with B = x.size // input_dim
    """
    x2 = jnp.reshape(x, (-1, input_dim))
    B = x2.shape[0]

    coeffs = jacobi_coeffs.astype(jnp.float32)
    # Degree-0 contribution: dot(ones, C[:, :, 0]) == column sums -> (1, O).
    bias = jnp.sum(coeffs[:, :, 0], axis=0).reshape(1, output_dim)

    if degree == 0:
        return jnp.broadcast_to(bias, (B, output_dim)).astype(out_dtype)

    # --- g-packing so both input (g*I) and output (g*O) lane dims are
    # multiples of 128.  Typical KAN layers have small I/O, so the g-times
    # larger block-diagonal weight stays a few hundred KiB and resident.
    g1 = 128 // math.gcd(input_dim, 128)
    g2 = 128 // math.gcd(output_dim, 128)
    g = (g1 * g2) // math.gcd(g1, g2)
    gI = g * input_dim
    gO = g * output_dim

    # Block-diagonal fused weight:
    #   w[d-1, j*I + i, k*O + o] = coeffs[i, o, d] if j == k else 0
    eye_g = jnp.eye(g, dtype=jnp.float32)
    w = jnp.einsum("jk,iod->djiko", eye_g, coeffs[:, :, 1:]).reshape(
        degree, gI, gO).astype(matmul_dtype)
    bias_p = jnp.tile(bias, (1, g))                     # (1, gO)

    x2 = x2.astype(x_dtype)

    # --- tiling in packed rows (each packed row = g batch rows) ---
    R = -(-B // g)                                      # packed rows needed
    if R <= 256:
        tbr = _round_up(R, 8)                           # single small tile
    else:
        tbr = _round_up(max(tb // g, 256), 256)
        # v7x has 2 TensorCores: keep the 'parallel' grid axis at >= 2 steps.
        tbr = min(tbr, _round_up(-(-R // 2), 256))

    # --- VMEM accounting: lane-padded tiles, double-buffering, in-kernel
    # temporaries (x_f32, p_prev/curr/next + slack, f32 accumulator). ---
    xb = jnp.dtype(x_dtype).itemsize
    ob = jnp.dtype(out_dtype).itemsize
    wb = jnp.dtype(matmul_dtype).itemsize
    resident = (2 * degree * gI * gO * wb               # fused coeffs
                + 2 * 8 * gO * 4)                       # bias, sublane-padded
    per_row = (2 * gI * xb                              # x tile (double-buffered)
               + 2 * gO * ob                            # out tile (double-buffered)
               + 5 * gI * 4                             # recurrence temporaries
               + gO * 4)                                # f32 accumulator
    budget = 40 * 2**20                                 # headroom under 48 MiB cap
    tbr_cap = max(8, ((budget - resident) // per_row) // 8 * 8)
    tbr = min(tbr, tbr_cap)
    # TODO(synk): for very large input_dim*output_dim*degree the resident
    # block-diagonal weight itself could exceed the VMEM budget; such configs
    # would need a K-axis grid reduction instead of a fully resident weight.

    R_pad = _round_up(R, tbr)
    B_pad = R_pad * g
    if B_pad != B:
        x2 = jnp.pad(x2, ((0, B_pad - B), (0, 0)))
    x_packed = x2.reshape(R_pad, gI)                    # row-major view: free

    need = resident + tbr * per_row
    vmem_limit = int(min(48 * 2**20, max(32 * 2**20, int(1.25 * need))))

    kernel = _make_jacobi_kernel(degree, float(a), float(b))

    out = pl.pallas_call(
        kernel,
        out_shape=jax.ShapeDtypeStruct((R_pad, gO), out_dtype),
        grid_spec=pltpu.PrefetchScalarGridSpec(
            num_scalar_prefetch=0,
            grid=(R_pad // tbr,),
            in_specs=[
                pl.BlockSpec((tbr, gI), lambda m: (m, 0)),
                # Constant index_maps: fetched once, resident across the grid.
                pl.BlockSpec((degree, gI, gO), lambda m: (0, 0, 0)),
                pl.BlockSpec((1, gO), lambda m: (0, 0)),
            ],
            out_specs=pl.BlockSpec((tbr, gO), lambda m: (m, 0)),
        ),
        compiler_params=pltpu.CompilerParams(
            dimension_semantics=("parallel",),
            vmem_limit_bytes=vmem_limit,
        ),
    )(x_packed, w, bias_p)

    # Row-major contiguous reshape back to per-batch-row layout (free view).
    return out.reshape(B_pad, output_dim)[:B]


def _reference_jacobi(x, coeffs, input_dim, degree, a, b):
    """Pure-JAX reference mirroring the PyTorch forward (sanity check)."""
    x2 = jnp.reshape(x, (-1, input_dim)).astype(jnp.float32)
    B = x2.shape[0]
    polys = [jnp.ones((B, input_dim), jnp.float32)]
    if degree > 0:
        polys.append((a - b + (a + b + 2.0) * x2) / 2.0)
    for i in range(2, degree + 1):
        t_k, t_k1, t_k2 = _jacobi_thetas(i, a, b)
        polys.append((t_k * x2 + t_k1) * polys[-1] - t_k2 * polys[-2])
    jacobi = jnp.stack(polys, axis=-1)  # (B, I, D+1)
    return jnp.einsum("bid,iod->bo", jacobi, coeffs.astype(jnp.float32))


if __name__ == "__main__":
    # Small deterministic configuration consistent with the module's forward:
    # x of shape (2, 4, 16) flattens to (8, input_dim=16) rows.
    input_dim = 16
    output_dim = 8
    degree = 4
    a_par, b_par = 1.0, 1.0

    key = jax.random.PRNGKey(0)
    kx, kc = jax.random.split(key)

    x = jax.random.normal(kx, (2, 4, input_dim), dtype=jnp.float32)

    # nn.init.normal_(param, mean=0.0, std=1/(input_dim*(degree+1)))
    std = 1.0 / (input_dim * (degree + 1))
    jacobi_coeffs = std * jax.random.normal(
        kc, (input_dim, output_dim, degree + 1), dtype=jnp.float32
    )

    y = jacobi_layer(
        x,
        jacobi_coeffs,
        input_dim=input_dim,
        output_dim=output_dim,
        degree=degree,
        a=a_par,
        b=b_par,
    )
    jax.block_until_ready(y)

    # Everything runs in f32 by default, so compare directly against the
    # f32 PyTorch-equivalent reference (no quantized self-consistency check).
    y_ref = _reference_jacobi(x, jacobi_coeffs, input_dim, degree, a_par, b_par)

    assert y.shape == (8, output_dim)
    assert jnp.allclose(y, y_ref, atol=1e-4, rtol=1e-4), "mismatch vs reference"

    print("KERNEL_OK")
</pallas_src>

<mosaic_0001>
module attributes {stable_mosaic.version = 11 : i64} {
  func.func @kernel(%arg0: i32, %arg1: memref<8x256xf32, #tpu.memory_space<vmem>>, %arg2: memref<4x256x128xf32, #tpu.memory_space<vmem>>, %arg3: memref<1x128xf32, #tpu.memory_space<vmem>>, %arg4: memref<8x128xf32, #tpu.memory_space<vmem>>) attributes {dimension_semantics = [#tpu.dimension_semantics<parallel>], iteration_bounds = array<i64: 1>, scalar_prefetch = 0 : i64, scratch_operands = 0 : i64, tpu.core_type = #tpu.core_type<tc>, window_params = [{transform_indices = @transform_0, window_bounds = array<i64: 8, 256>}, {pipeline_mode = #tpu.pipeline_mode<synchronous>, transform_indices = @transform_1, window_bounds = array<i64: 4, 256, 128>}, {pipeline_mode = #tpu.pipeline_mode<synchronous>, transform_indices = @transform_2, window_bounds = array<i64: 1, 128>}, {transform_indices = @transform_3, window_bounds = array<i64: 8, 128>}]} {
    %c0 = arith.constant 0 : index
    %c0_0 = arith.constant 0 : index
    %0 = vector.load %arg1[%c0, %c0_0] : memref<8x256xf32, #tpu.memory_space<vmem>>, vector<8x256xf32>
    %cst = arith.constant 4.000000e+00 : f32
    %1 = vector.broadcast %cst : f32 to vector<8x256xf32>
    %2 = arith.mulf %1, %0 : vector<8x256xf32>
    %cst_1 = arith.constant 0.000000e+00 : f32
    %3 = vector.broadcast %cst_1 : f32 to vector<8x256xf32>
    %4 = arith.addf %3, %2 : vector<8x256xf32>
    %cst_2 = arith.constant 5.000000e-01 : f32
    %5 = vector.broadcast %cst_2 : f32 to vector<8x256xf32>
    %6 = arith.mulf %4, %5 : vector<8x256xf32>
    %c0_3 = arith.constant 0 : index
    %c0_4 = arith.constant 0 : index
    %c0_5 = arith.constant 0 : index
    %7 = vector.load %arg2[%c0_3, %c0_4, %c0_5] : memref<4x256x128xf32, #tpu.memory_space<vmem>>, vector<1x256x128xf32>
    %8 = vector.shape_cast %7 : vector<1x256x128xf32> to vector<256x128xf32>
    %cst_6 = arith.constant dense<0.000000e+00> : vector<8x128xf32>
    %9 = tpu.matmul %6, %8, %cst_6 {dimension_numbers = #tpu.dot_dimension_numbers<[1], [0], [0], [1], [0, 0, 1, 1], [], []>} : vector<8x256xf32>, vector<256x128xf32>, vector<8x128xf32> -> vector<8x128xf32>
    %cst_7 = arith.constant 1.875000e+00 : f32
    %10 = vector.broadcast %cst_7 : f32 to vector<8x256xf32>
    %11 = arith.mulf %10, %0 : vector<8x256xf32>
    %cst_8 = arith.constant 0.000000e+00 : f32
    %12 = vector.broadcast %cst_8 : f32 to vector<8x256xf32>
    %13 = arith.addf %11, %12 : vector<8x256xf32>
    %14 = arith.mulf %13, %6 : vector<8x256xf32>
    %cst_9 = arith.constant 7.500000e-01 : f32
    %15 = vector.broadcast %cst_9 : f32 to vector<8x256xf32>
    %16 = arith.subf %14, %15 : vector<8x256xf32>
    %c1 = arith.constant 1 : index
    %c0_10 = arith.constant 0 : index
    %c0_11 = arith.constant 0 : index
    %17 = vector.load %arg2[%c1, %c0_10, %c0_11] : memref<4x256x128xf32, #tpu.memory_space<vmem>>, vector<1x256x128xf32>
    %18 = vector.shape_cast %17 : vector<1x256x128xf32> to vector<256x128xf32>
    %cst_12 = arith.constant dense<0.000000e+00> : vector<8x128xf32>
    %19 = tpu.matmul %16, %18, %cst_12 {dimension_numbers = #tpu.dot_dimension_numbers<[1], [0], [0], [1], [0, 0, 1, 1], [], []>} : vector<8x256xf32>, vector<256x128xf32>, vector<8x128xf32> -> vector<8x128xf32>
    %20 = arith.addf %9, %19 : vector<8x128xf32>
    %cst_13 = arith.constant 8.000000e-01 : f32
    %21 = vector.broadcast %cst_13 : f32 to vector<8x256xf32>
    %22 = arith.mulf %21, %6 : vector<8x256xf32>
    %cst_14 = arith.constant 1.86666667 : f32
    %23 = vector.broadcast %cst_14 : f32 to vector<8x256xf32>
    %24 = arith.mulf %23, %0 : vector<8x256xf32>
    %cst_15 = arith.constant 0.000000e+00 : f32
    %25 = vector.broadcast %cst_15 : f32 to vector<8x256xf32>
    %26 = arith.addf %24, %25 : vector<8x256xf32>
    %27 = arith.mulf %26, %16 : vector<8x256xf32>
    %28 = arith.subf %27, %22 : vector<8x256xf32>
    %c2 = arith.constant 2 : index
    %c0_16 = arith.constant 0 : index
    %c0_17 = arith.constant 0 : index
    %29 = vector.load %arg2[%c2, %c0_16, %c0_17] : memref<4x256x128xf32, #tpu.memory_space<vmem>>, vector<1x256x128xf32>
    %30 = vector.shape_cast %29 : vector<1x256x128xf32> to vector<256x128xf32>
    %cst_18 = arith.constant dense<0.000000e+00> : vector<8x128xf32>
    %31 = tpu.matmul %28, %30, %cst_18 {dimension_numbers = #tpu.dot_dimension_numbers<[1], [0], [0], [1], [0, 0, 1, 1], [], []>} : vector<8x256xf32>, vector<256x128xf32>, vector<8x128xf32> -> vector<8x128xf32>
    %32 = arith.addf %20, %31 : vector<8x128xf32>
    %cst_19 = arith.constant 0.833333313 : f32
    %33 = vector.broadcast %cst_19 : f32 to vector<8x256xf32>
    %34 = arith.mulf %33, %16 : vector<8x256xf32>
    %cst_20 = arith.constant 1.875000e+00 : f32
    %35 = vector.broadcast %cst_20 : f32 to vector<8x256xf32>
    %36 = arith.mulf %35, %0 : vector<8x256xf32>
    %cst_21 = arith.constant 0.000000e+00 : f32
    %37 = vector.broadcast %cst_21 : f32 to vector<8x256xf32>
    %38 = arith.addf %36, %37 : vector<8x256xf32>
    %39 = arith.mulf %38, %28 : vector<8x256xf32>
    %40 = arith.subf %39, %34 : vector<8x256xf32>
    %c3 = arith.constant 3 : index
    %c0_22 = arith.constant 0 : index
    %c0_23 = arith.constant 0 : index
    %41 = vector.load %arg2[%c3, %c0_22, %c0_23] : memref<4x256x128xf32, #tpu.memory_space<vmem>>, vector<1x256x128xf32>
    %42 = vector.shape_cast %41 : vector<1x256x128xf32> to vector<256x128xf32>
    %cst_24 = arith.constant dense<0.000000e+00> : vector<8x128xf32>
    %43 = tpu.matmul %40, %42, %cst_24 {dimension_numbers = #tpu.dot_dimension_numbers<[1], [0], [0], [1], [0, 0, 1, 1], [], []>} : vector<8x256xf32>, vector<256x128xf32>, vector<8x128xf32> -> vector<8x128xf32>
    %44 = arith.addf %32, %43 : vector<8x128xf32>
    %c0_25 = arith.constant 0 : index
    %c0_26 = arith.constant 0 : index
    %45 = vector.load %arg3[%c0_25, %c0_26] : memref<1x128xf32, #tpu.memory_space<vmem>>, vector<1x128xf32>
    %46 = vector.broadcast %45 : vector<1x128xf32> to vector<8x128xf32>
    %47 = arith.addf %44, %46 : vector<8x128xf32>
    %c0_27 = arith.constant 0 : index
    %c0_28 = arith.constant 0 : index
    %48 = vector.load %arg4[%c0_27, %c0_28] : memref<8x128xf32, #tpu.memory_space<vmem>>, vector<8x128xf32>
    tpu.vector_store %arg4[%c0_27, %c0_28], %47 {strides = array<i32>} : memref<8x128xf32, #tpu.memory_space<vmem>>, vector<8x128xf32>,
    return
  }
  func.func @transform_0(%arg0: i32) -> (i32, i32) {
    %c0_i32 = arith.constant 0 : i32
    %c0_i32_0 = arith.constant 0 : i32
    return %arg0, %c0_i32 : i32, i32
  }
  func.func @transform_1(%arg0: i32) -> (i32, i32, i32) {
    %c0_i32 = arith.constant 0 : i32
    %c0_i32_0 = arith.constant 0 : i32
    %c0_i32_1 = arith.constant 0 : i32
    %c0_i32_2 = arith.constant 0 : i32
    return %c0_i32, %c0_i32_0, %c0_i32_1 : i32, i32, i32
  }
  func.func @transform_2(%arg0: i32) -> (i32, i32) {
    %c0_i32 = arith.constant 0 : i32
    %c0_i32_0 = arith.constant 0 : i32
    %c0_i32_1 = arith.constant 0 : i32
    return %c0_i32, %c0_i32_0 : i32, i32
  }
  func.func @transform_3(%arg0: i32) -> (i32, i32) {
    %c0_i32 = arith.constant 0 : i32
    %c0_i32_0 = arith.constant 0 : i32
    return %arg0, %c0_i32 : i32, i32
  }
}

</mosaic_0001>

<bundles_post_ra>
// kernel: jacobi_layer.1
= control target key start
LH: loop header
LB: loop body
LE: loop exit
PB: predicated region body
PF: predicated region fallthrough
CT: control target
= control target key end

     0   :  { %s882_s1 = inlined_call_operand.vmem [shape: f32[4,256,128], index: 1, kind: input, shape index: {}]   ;;  %s883_s0 = inlined_call_operand.vmem [shape: f32[8,256], index: 0, kind: input, shape index: {}]   ;;  %s884_s2 = inlined_call_operand.vmem [shape: f32[1,128], index: 2, kind: input, shape index: {}]   ;;  %s885_s3 = inlined_call_operand.vmem [shape: f32[8,128], index: 3, kind: output, shape index: {}]  }
   0x1   :  { %v366_v0 = vld [vmem:[%s882_s1 + $0x178] sm:$0xff]  ;;  %v365_v4 = vld [vmem:[%s882_s1 + $0x170] sm:$0xff]  ;;  %v364_v8 = vld [vmem:[%s882_s1 + $0x168] sm:$0xff] }
   0x2   :  { %v382_v1 = vld [vmem:[%s882_s1 + $0x1f8] sm:$0xff]  ;;  %95 = vmatpush.msra.mxu0 %v366_v0  ;;  %v381_v5 = vld [vmem:[%s882_s1 + $0x1f0] sm:$0xff]  ;;  %v380_v9 = vld [vmem:[%s882_s1 + $0x1e8] sm:$0xff] }
   0x3   :  { %v37_v2 = vld [vmem:[%s882_s1 + $0x78] sm:$0xff]  ;;  %115 = vmatpush.msra.mxu1 %v382_v1  ;;  %v36_v6 = vld [vmem:[%s882_s1 + $0x70] sm:$0xff]  ;;  %v35_v10 = vld [vmem:[%s882_s1 + $0x68] sm:$0xff] }
   0x4   :  { %v53_v3 = vld [vmem:[%s882_s1 + $0xf8] sm:$0xff]  ;;  %135 = vmatpush.msra.mxu2 %v37_v2  ;;  %v52_v7 = vld [vmem:[%s882_s1 + $0xf0] sm:$0xff]  ;;  %96 = vmatpush.msra.mxu0 %v365_v4  ;;  %v51_v11 = vld [vmem:[%s882_s1 + $0xe8] sm:$0xff] }
   0x5   :  { %155 = vmatpush.msra.mxu3 %v53_v3  ;;  %116 = vmatpush.msra.mxu1 %v381_v5  ;;  %v363_v12 = vld [vmem:[%s882_s1 + $0x160] sm:$0xff]  ;;  %v362_v16 = vld [vmem:[%s882_s1 + $0x158] sm:$0xff]  ;;  %v361_v20 = vld [vmem:[%s882_s1 + $0x150] sm:$0xff] }
   0x6   :  { %136 = vmatpush.msra.mxu2 %v36_v6  ;;  %v379_v13 = vld [vmem:[%s882_s1 + $0x1e0] sm:$0xff]  ;;  %97 = vmatpush.msra.mxu0 %v364_v8  ;;  %v378_v17 = vld [vmem:[%s882_s1 + $0x1d8] sm:$0xff]  ;;  %v377_v21 = vld [vmem:[%s882_s1 + $0x1d0] sm:$0xff] }
   0x7   :  { %156 = vmatpush.msra.mxu3 %v52_v7  ;;  %117 = vmatpush.msra.mxu1 %v380_v9  ;;  %v34_v14 = vld [vmem:[%s882_s1 + $0x60] sm:$0xff]  ;;  %v33_v18 = vld [vmem:[%s882_s1 + $0x58] sm:$0xff]  ;;  %v32_v22 = vld [vmem:[%s882_s1 + $0x50] sm:$0xff] }
   0x8   :  { %v50_v15 = vld [vmem:[%s882_s1 + $0xe0] sm:$0xff]  ;;  %137 = vmatpush.msra.mxu2 %v35_v10  ;;  %98 = vmatpush.msra.mxu0 %v363_v12  ;;  %v49_v19 = vld [vmem:[%s882_s1 + $0xd8] sm:$0xff]  ;;  %v48_v23 = vld [vmem:[%s882_s1 + $0xd0] sm:$0xff] }
   0x9   :  { %157 = vmatpush.msra.mxu3 %v51_v11  ;;  %118 = vmatpush.msra.mxu1 %v379_v13  ;;  %v360_v24 = vld [vmem:[%s882_s1 + $0x148] sm:$0xff]  ;;  %v359_v28 = vld [vmem:[%s882_s1 + $0x140] sm:$0xff]  ;;  %v358_v32 = vld [vmem:[%s882_s1 + $0x138] sm:$0xff] }
   0xa   :  { %138 = vmatpush.msra.mxu2 %v34_v14  ;;  %99 = vmatpush.msra.mxu0 %v362_v16  ;;  %v376_v25 = vld [vmem:[%s882_s1 + $0x1c8] sm:$0xff]  ;;  %v375_v29 = vld [vmem:[%s882_s1 + $0x1c0] sm:$0xff]  ;;  %v374_v33 = vld [vmem:[%s882_s1 + $0x1b8] sm:$0xff] }
   0xb   :  { %158 = vmatpush.msra.mxu3 %v50_v15  ;;  %119 = vmatpush.msra.mxu1 %v378_v17  ;;  %v31_v26 = vld [vmem:[%s882_s1 + $0x48] sm:$0xff]  ;;  %v30_v30 = vld [vmem:[%s882_s1 + $0x40] sm:$0xff]  ;;  %v29_v34 = vld [vmem:[%s882_s1 + $0x38] sm:$0xff] }
   0xc   :  { %139 = vmatpush.msra.mxu2 %v33_v18  ;;  %100 = vmatpush.msra.mxu0 %v361_v20  ;;  %v47_v27 = vld [vmem:[%s882_s1 + $0xc8] sm:$0xff]  ;;  %v46_v31 = vld [vmem:[%s882_s1 + $0xc0] sm:$0xff]  ;;  %v45_v35 = vld [vmem:[%s882_s1 + $0xb8] sm:$0xff] }
   0xd   :  { %159 = vmatpush.msra.mxu3 %v49_v19  ;;  %120 = vmatpush.msra.mxu1 %v377_v21  ;;  %v357_v36 = vld [vmem:[%s882_s1 + $0x130] sm:$0xff]  ;;  %v356_v40 = vld [vmem:[%s882_s1 + $0x128] sm:$0xff]  ;;  %v355_v44 = vld [vmem:[%s882_s1 + $0x120] sm:$0xff] }
   0xe   :  { %140 = vmatpush.msra.mxu2 %v32_v22  ;;  %101 = vmatpush.msra.mxu0 %v360_v24  ;;  %v373_v37 = vld [vmem:[%s882_s1 + $0x1b0] sm:$0xff]  ;;  %v372_v41 = vld [vmem:[%s882_s1 + $0x1a8] sm:$0xff]  ;;  %v371_v45 = vld [vmem:[%s882_s1 + $0x1a0] sm:$0xff] }
   0xf   :  { %160 = vmatpush.msra.mxu3 %v48_v23  ;;  %121 = vmatpush.msra.mxu1 %v376_v25  ;;  %v28_v38 = vld [vmem:[%s882_s1 + $0x30] sm:$0xff]  ;;  %v27_v42 = vld [vmem:[%s882_s1 + $0x28] sm:$0xff]  ;;  %v26_v46 = vld [vmem:[%s882_s1 + $0x20] sm:$0xff] }
  0x10   :  { %141 = vmatpush.msra.mxu2 %v31_v26  ;;  %102 = vmatpush.msra.mxu0 %v359_v28  ;;  %v44_v39 = vld [vmem:[%s882_s1 + $0xb0] sm:$0xff]  ;;  %v43_v43 = vld [vmem:[%s882_s1 + $0xa8] sm:$0xff]  ;;  %v42_v47 = vld [vmem:[%s882_s1 + $0xa0] sm:$0xff] }
  0x11   :  { %161 = vmatpush.msra.mxu3 %v47_v27  ;;  %122 = vmatpush.msra.mxu1 %v375_v29  ;;  %v354_v48 = vld [vmem:[%s882_s1 + $0x118] sm:$0xff]  ;;  %v353_v52 = vld [vmem:[%s882_s1 + $0x110] sm:$0xff]  ;;  %v352_v56 = vld [vmem:[%s882_s1 + $0x108] sm:$0xff] }
  0x12   :  { %142 = vmatpush.msra.mxu2 %v30_v30  ;;  %103 = vmatpush.msra.mxu0 %v358_v32  ;;  %v370_v49 = vld [vmem:[%s882_s1 + $0x198] sm:$0xff]  ;;  %v369_v53 = vld [vmem:[%s882_s1 + $0x190] sm:$0xff]  ;;  %v368_v57 = vld [vmem:[%s882_s1 + $0x188] sm:$0xff] }
  0x13   :  { %162 = vmatpush.msra.mxu3 %v46_v31  ;;  %123 = vmatpush.msra.mxu1 %v374_v33  ;;  %v25_v50 = vld [vmem:[%s882_s1 + $0x18] sm:$0xff]  ;;  %v24_v54 = vld [vmem:[%s882_s1 + $0x10] sm:$0xff]  ;;  %v23_v58 = vld [vmem:[%s882_s1 + $0x8] sm:$0xff] }
  0x14   :  { %143 = vmatpush.msra.mxu2 %v29_v34  ;;  %104 = vmatpush.msra.mxu0 %v357_v36  ;;  %v41_v51 = vld [vmem:[%s882_s1 + $0x98] sm:$0xff]  ;;  %v40_v55 = vld [vmem:[%s882_s1 + $0x90] sm:$0xff]  ;;  %v39_v59 = vld [vmem:[%s882_s1 + $0x88] sm:$0xff] }
  0x15   :  { %163 = vmatpush.msra.mxu3 %v45_v35  ;;  %124 = vmatpush.msra.mxu1 %v373_v37  ;;  %v351_v60 = vld [vmem:[%s882_s1 + $0x100] sm:$0xff]  ;;  %v398_v0 = vld [vmem:[%s882_s1 + $0x278] sm:$0xff]  ;;  %v397_v4 = vld [vmem:[%s882_s1 + $0x270] sm:$0xff] }
  0x16   :  { %144 = vmatpush.msra.mxu2 %v28_v38  ;;  %105 = vmatpush.msra.mxu0 %v356_v40  ;;  %v367_v61 = vld [vmem:[%s882_s1 + $0x180] sm:$0xff]  ;;  %v414_v1 = vld [vmem:[%s882_s1 + $0x2f8] sm:$0xff]  ;;  %v413_v5 = vld [vmem:[%s882_s1 + $0x2f0] sm:$0xff] }
  0x17   :  { %164 = vmatpush.msra.mxu3 %v44_v39  ;;  %125 = vmatpush.msra.mxu1 %v372_v41  ;;  %v22_v62 = vld [vmem:[%s882_s1] sm:$0xff]  ;;  %v430_v2 = vld [vmem:[%s882_s1 + $0x378] sm:$0xff]  ;;  %v429_v6 = vld [vmem:[%s882_s1 + $0x370] sm:$0xff] }
  0x18   :  { %145 = vmatpush.msra.mxu2 %v27_v42  ;;  %106 = vmatpush.msra.mxu0 %v355_v44  ;;  %v38_v63 = vld [vmem:[%s882_s1 + $0x80] sm:$0xff]  ;;  %v446_v3 = vld [vmem:[%s882_s1 + $0x3f8] sm:$0xff]  ;;  %v445_v7 = vld [vmem:[%s882_s1 + $0x3f0] sm:$0xff] }
  0x19   :  { %165 = vmatpush.msra.mxu3 %v43_v43  ;;  %126 = vmatpush.msra.mxu1 %v371_v45  ;;  %v396_v8 = vld [vmem:[%s882_s1 + $0x268] sm:$0xff]  ;;  %v395_v12 = vld [vmem:[%s882_s1 + $0x260] sm:$0xff]  ;;  %v394_v19 = vld [vmem:[%s882_s1 + $0x258] sm:$0xff] }
  0x1a   :  { %146 = vmatpush.msra.mxu2 %v26_v46  ;;  %107 = vmatpush.msra.mxu0 %v354_v48  ;;  %v412_v9 = vld [vmem:[%s882_s1 + $0x2e8] sm:$0xff]  ;;  %v411_v13 = vld [vmem:[%s882_s1 + $0x2e0] sm:$0xff]  ;;  %v410_v20 = vld [vmem:[%s882_s1 + $0x2d8] sm:$0xff] }
  0x1b   :  { %166 = vmatpush.msra.mxu3 %v42_v47  ;;  %127 = vmatpush.msra.mxu1 %v370_v49  ;;  %v428_v10 = vld [vmem:[%s882_s1 + $0x368] sm:$0xff]  ;;  %v14_v14 = vld [vmem:[%s883_s0] sm:$0xff]  ;;  %v426_v22 = vld [vmem:[%s882_s1 + $0x358] sm:$0xff] }
  0x1c   :  { %147 = vmatpush.msra.mxu2 %v25_v50  ;;  %108 = vmatpush.msra.mxu0 %v353_v52  ;;  %v444_v11 = vld [vmem:[%s882_s1 + $0x3e8] sm:$0xff]  ;;  %v427_v15 = vld [vmem:[%s882_s1 + $0x360] sm:$0xff]  ;;  %v16_v17 = vmul.f32 4.0, %v14_v14  ;;  %v442_v23 = vld [vmem:[%s882_s1 + $0x3d8] sm:$0xff]  ;;  %v734_v27 = vmul.f32 1.875, %v14_v14 }
  0x1d   :  { %167 = vmatpush.msra.mxu3 %v41_v51  ;;  %128 = vmatpush.msra.mxu1 %v369_v53  ;;  %v443_v16 = vld [vmem:[%s882_s1 + $0x3e0] sm:$0xff]  ;;  %v15_v18 = vld [vmem:[%s883_s0 + $0x8] sm:$0xff]  ;;  %v393_v24 = vld [vmem:[%s882_s1 + $0x250] sm:$0xff]  ;;  %v177_v50 = vmul.f32 1.8666667, %v14_v14 }
  0x1e   :  { %148 = vmatpush.msra.mxu2 %v24_v54  ;;  %109 = vmatpush.msra.mxu0 %v352_v56  ;;  %v17_v21 = vmul.f32 4.0, %v15_v18  ;;  %v409_v25 = vld [vmem:[%s882_s1 + $0x2d0] sm:$0xff]  ;;  %v732_v26 = vmul.f32 0.5, %v16_v17  ;;  %v738_v29 = vmul.f32 1.875, %v15_v18  ;;  %v392_v32 = vld [vmem:[%s882_s1 + $0x248] sm:$0xff]  ;;  %v391_v36 = vld [vmem:[%s882_s1 + $0x240] sm:$0xff] }
  0x1f   :  { %168 = vmatpush.msra.mxu3 %v40_v55  ;;  %129 = vmatpush.msra.mxu1 %v368_v57  ;;  %v425_v30 = vld [vmem:[%s882_s1 + $0x350] sm:$0xff]  ;;  %v408_v33 = vld [vmem:[%s882_s1 + $0x2c8] sm:$0xff]  ;;  %v407_v37 = vld [vmem:[%s882_s1 + $0x2c0] sm:$0xff]  ;;  %v178_v51 = vmul.f32 1.8666667, %v15_v18 }
  0x20   :  { %149 = vmatpush.msra.mxu2 %v23_v58  ;;  %110 = vmatpush.msra.mxu0 %v351_v60  ;;  %v736_v28 = vmul.f32 0.5, %v17_v21  ;;  %v441_v31 = vld [vmem:[%s882_s1 + $0x3d0] sm:$0xff]  ;;  %v424_v34 = vld [vmem:[%s882_s1 + $0x348] sm:$0xff]  ;;  %v58_v38 = vmul.f32 %v734_v27, %v732_v26  ;;  %v423_v40 = vld [vmem:[%s882_s1 + $0x340] sm:$0xff] }
  0x21   :  { %169 = vmatpush.msra.mxu3 %v39_v59  ;;  %130 = vmatpush.msra.mxu1 %v367_v61  ;;  %v440_v35 = vld [vmem:[%s882_s1 + $0x3c8] sm:$0xff]  ;;  %v439_v41 = vld [vmem:[%s882_s1 + $0x3c0] sm:$0xff]  ;;  %v390_v42 = vld [vmem:[%s882_s1 + $0x238] sm:$0xff]  ;;  %v175_v59 = vmul.f32 0.8, %v732_v26 }
  0x22   :  { %150 = vmatpush.msra.mxu2 %v22_v62  ;;  %218 = vmatpush.msrb.mxu0 %v398_v0  ;;  %v59_v39 = vmul.f32 %v738_v29, %v736_v28  ;;  %v406_v43 = vld [vmem:[%s882_s1 + $0x2b8] sm:$0xff]  ;;  %v389_v46 = vld [vmem:[%s882_s1 + $0x230] sm:$0xff]  ;;  %v349_v48 = vadd.f32 -0.75, %v58_v38  ;;  %v388_v54 = vld [vmem:[%s882_s1 + $0x228] sm:$0xff]  ;;  %v176_v61 = vmul.f32 0.8, %v736_v28 }
  0x23   :  { %170 = vmatpush.msra.mxu3 %v38_v63  ;;  %238 = vmatpush.msrb.mxu1 %v414_v1  ;;  %v422_v44 = vld [vmem:[%s882_s1 + $0x338] sm:$0xff]  ;;  %v405_v47 = vld [vmem:[%s882_s1 + $0x2b0] sm:$0xff]  ;;  %v404_v55 = vld [vmem:[%s882_s1 + $0x2a8] sm:$0xff] }
  0x24   :  { %298 = vmatpush.msrb.mxu2 %v430_v2  ;;  %219 = vmatpush.msrb.mxu0 %v397_v4  ;;  %v438_v45 = vld [vmem:[%s882_s1 + $0x3b8] sm:$0xff]  ;;  %v350_v49 = vadd.f32 -0.75, %v59_v39  ;;  %v421_v52 = vld [vmem:[%s882_s1 + $0x330] sm:$0xff]  ;;  %v420_v56 = vld [vmem:[%s882_s1 + $0x328] sm:$0xff]  ;;  %v181_v60 = vmul.f32 %v349_v48, %v177_v50  ;;  %v259_v14 = vmul.f32 0.8333333, %v349_v48 }
  0x25   :  { %318 = vmatpush.msrb.mxu3 %v446_v3  ;;  %239 = vmatpush.msrb.mxu1 %v413_v5  ;;  %v437_v53 = vld [vmem:[%s882_s1 + $0x3b0] sm:$0xff]  ;;  %v436_v57 = vld [vmem:[%s882_s1 + $0x3a8] sm:$0xff]  ;;  %v387_v58 = vld [vmem:[%s882_s1 + $0x220] sm:$0xff] }
  0x26   :  { %299 = vmatpush.msrb.mxu2 %v429_v6  ;;  %220 = vmatpush.msrb.mxu0 %v396_v8  ;;  %v182_v62 = vmul.f32 %v350_v49, %v178_v51  ;;  %v403_v63 = vld [vmem:[%s882_s1 + $0x2a0] sm:$0xff]  ;;  %v386_v2 = vld [vmem:[%s882_s1 + $0x218] sm:$0xff]  ;;  %v183_v4 = vsub.f32 %v181_v60, %v175_v59  ;;  %v385_v8 = vld [vmem:[%s882_s1 + $0x210] sm:$0xff] }
  0x27   :  { %319 = vmatpush.msrb.mxu3 %v445_v7  ;;  %240 = vmatpush.msrb.mxu1 %v412_v9  ;;  %v419_v0 = vld [vmem:[%s882_s1 + $0x320] sm:$0xff]  ;;  %v402_v3 = vld [vmem:[%s882_s1 + $0x298] sm:$0xff]  ;;  %v401_v9 = vld [vmem:[%s882_s1 + $0x290] sm:$0xff] }
  0x28   :  { %300 = vmatpush.msrb.mxu2 %v428_v10  ;;  %221 = vmatpush.msrb.mxu0 %v395_v12  ;;  %v435_v1 = vld [vmem:[%s882_s1 + $0x3a0] sm:$0xff]  ;;  %v184_v5 = vsub.f32 %v182_v62, %v176_v61  ;;  %v418_v6 = vld [vmem:[%s882_s1 + $0x318] sm:$0xff]  ;;  %v417_v10 = vld [vmem:[%s882_s1 + $0x310] sm:$0xff] }
  0x29   :  { %320 = vmatpush.msrb.mxu3 %v444_v11  ;;  %241 = vmatpush.msrb.mxu1 %v411_v13  ;;  %v434_v7 = vld [vmem:[%s882_s1 + $0x398] sm:$0xff]  ;;  %v433_v11 = vld [vmem:[%s882_s1 + $0x390] sm:$0xff]  ;;  %v384_v12 = vld [vmem:[%s882_s1 + $0x208] sm:$0xff] }
  0x2a   :  { %301 = vmatpush.msrb.mxu2 %v427_v15  ;;  %222 = vmatpush.msrb.mxu0 %v394_v19  ;;  %v400_v13 = vld [vmem:[%s882_s1 + $0x288] sm:$0xff]  ;;  %v261_v15 = vmul.f32 %v183_v4, %v734_v27  ;;  %v262_v17 = vmul.f32 %v184_v5, %v738_v29  ;;  %v399_v21 = vld [vmem:[%s882_s1 + $0x280] sm:$0xff] }
  0x2b   :  { %321 = vmatpush.msrb.mxu3 %v443_v16  ;;  %242 = vmatpush.msrb.mxu1 %v410_v20  ;;  %v260_v16 = vmul.f32 0.8333333, %v350_v49  ;;  %v416_v18 = vld [vmem:[%s882_s1 + $0x308] sm:$0xff]  ;;  %v383_v20 = vld [vmem:[%s882_s1 + $0x200] sm:$0xff] }
  0x2c   :  { %302 = vmatpush.msrb.mxu2 %v426_v22  ;;  %223 = vmatpush.msrb.mxu0 %v393_v24  ;;  %v432_v19 = vld [vmem:[%s882_s1 + $0x388] sm:$0xff]  ;;  %v415_v22 = vld [vmem:[%s882_s1 + $0x300] sm:$0xff]  ;;  %v263_v24 = vsub.f32 %v261_v15, %v259_v14 }
  0x2d   :  { %322 = vmatpush.msrb.mxu3 %v442_v23  ;;  %243 = vmatpush.msrb.mxu1 %v409_v25  ;;  %v431_v23 = vld [vmem:[%s882_s1 + $0x380] sm:$0xff]  ;;  %v264_v25 = vsub.f32 %v262_v17, %v260_v16 }
  0x2e   :  { %303 = vmatpush.msrb.mxu2 %v425_v30  ;;  %224 = vmatpush.msrb.mxu0 %v392_v32 }
  0x2f   :  { %323 = vmatpush.msrb.mxu3 %v441_v31  ;;  %244 = vmatpush.msrb.mxu1 %v408_v33 }
  0x30   :  { %304 = vmatpush.msrb.mxu2 %v424_v34  ;;  %225 = vmatpush.msrb.mxu0 %v391_v36 }
  0x31   :  { %324 = vmatpush.msrb.mxu3 %v440_v35  ;;  %245 = vmatpush.msrb.mxu1 %v407_v37 }
  0x32   :  { %305 = vmatpush.msrb.mxu2 %v423_v40  ;;  %226 = vmatpush.msrb.mxu0 %v390_v42  ;;  %v447_v40 = vld [vmem:[%s884_s2] ss:$0 sm:$0xff] }
  0x33   :  { %325 = vmatpush.msrb.mxu3 %v439_v41  ;;  %246 = vmatpush.msrb.mxu1 %v406_v43 }
  0x34   :  { %306 = vmatpush.msrb.mxu2 %v422_v44  ;;  %227 = vmatpush.msrb.mxu0 %v389_v46 }
  0x35   :  { %326 = vmatpush.msrb.mxu3 %v438_v45  ;;  %247 = vmatpush.msrb.mxu1 %v405_v47 }
  0x36   :  { %307 = vmatpush.msrb.mxu2 %v421_v52  ;;  %228 = vmatpush.msrb.mxu0 %v388_v54 }
  0x37   :  { %327 = vmatpush.msrb.mxu3 %v437_v53  ;;  %248 = vmatpush.msrb.mxu1 %v404_v55 }
  0x38   :  { %308 = vmatpush.msrb.mxu2 %v420_v56  ;;  %229 = vmatpush.msrb.mxu0 %v387_v58 }
  0x39   :  { %328 = vmatpush.msrb.mxu3 %v436_v57  ;;  %151 = vmatmul.f32.vlgmr.msra.gmra.mxu2 %v732_v26 }
  0x3a   :  { %249 = vmatpush.msrb.mxu1 %v403_v63  ;;  %309 = vmatpush.msrb.mxu2 %v419_v0 }
  0x3b   :  { %329 = vmatpush.msrb.mxu3 %v435_v1  ;;  %111 = vmatmul.f32.vlgmr.msra.gmra.mxu0 %v349_v48 }
  0x3c   :  { %131 = vmatmul.f32.vlgmr.msra.gmra.mxu1 %v350_v49  ;;  %171 = vmatmul.f32.vlgmr.msra.gmra.mxu3 %v736_v28 }
  0x3d   :  { %230 = vmatpush.msrb.mxu0 %v386_v2  ;;  %250 = vmatpush.msrb.mxu1 %v402_v3 }
  0x3e   :  { %310 = vmatpush.msrb.mxu2 %v418_v6  ;;  %330 = vmatpush.msrb.mxu3 %v434_v7 }
  0x3f   :  { %231 = vmatpush.msrb.mxu0 %v385_v8  ;;  %251 = vmatpush.msrb.mxu1 %v401_v9 }
  0x40   :  { %311 = vmatpush.msrb.mxu2 %v417_v10  ;;  %331 = vmatpush.msrb.mxu3 %v433_v11 }
  0x41   :  { %232 = vmatpush.msrb.mxu0 %v384_v12  ;;  %252 = vmatpush.msrb.mxu1 %v400_v13 }
  0x42   :  { %312 = vmatpush.msrb.mxu2 %v416_v18  ;;  %332 = vmatpush.msrb.mxu3 %v432_v19 }
  0x43   :  { %233 = vmatpush.msrb.mxu0 %v383_v20  ;;  %253 = vmatpush.msrb.mxu1 %v399_v21 }
  0x44   :  { %313 = vmatpush.msrb.mxu2 %v415_v22  ;;  %333 = vmatpush.msrb.mxu3 %v431_v23 }
  0x45   :  { %234 = vmatmul.f32.vlgmr.msrb.gmra.mxu0 %v183_v4  ;;  %254 = vmatmul.f32.vlgmr.msrb.gmra.mxu1 %v184_v5 }
  0x46   :  { %314 = vmatmul.f32.vlgmr.msrb.gmra.mxu2 %v263_v24  ;;  %334 = vmatmul.f32.vlgmr.msrb.gmra.mxu3 %v264_v25 }
  0xb8   :  { %v112_v26 = vpop.f32.mrf.mxu0 }
  0xb9   :  { %v132_v27 = vpop.f32.mrf.mxu1 }
  0xba   :  { %v133_v29 = vadd.f32 %v132_v27, %v112_v26 }
  0xbc   :  { %v152_v30 = vpop.f32.mrf.mxu2 }
  0xbd   :  { %v153_v33 = vadd.f32 %v152_v30, %v133_v29 }
  0xbf   :  { %v172_v28 = vpop.f32.mrf.mxu3 }
  0xc0   :  { %v173_v35 = vadd.f32 %v172_v28, %v153_v33 }
  0xc2   :  { %v235_v31 = vpop.f32.mrf.mxu0  ;;  %v255_v32 = vpop.f32.mrf.mxu1 }
  0xc3   :  { %v256_v34 = vadd.f32 %v255_v32, %v235_v31 }
  0xc5   :  { %v258_v38 = vadd.f32 %v256_v34, %v173_v35 }
  0xc9   :  { %v315_v36 = vpop.f32.mrf.mxu2  ;;  %v335_v37 = vpop.f32.mrf.mxu3 }
  0xca   :  { %v336_v39 = vadd.f32 %v335_v37, %v315_v36 }
  0xcc   :  { %v338_v41 = vadd.f32 %v336_v39, %v258_v38 }
  0xce   :  { %v343_v42 = vadd.f32 %v447_v40, %v338_v41 }
  0xd0   :  { %344 = vst [vmem:[%s885_s3] sm:$0xff] %v343_v42 }

</bundles_post_ra>
